<compile_context>
chip_gen: v5e
topology: v5e:2x2
jax: 0.10.0
libtpu: 0.0.40
codegen_flags: <defaults>
</compile_context>

<pallas_src>
import functools

import jax
import jax.numpy as jnp
from jax import lax
from jax.experimental import pallas as pl
from jax.experimental.pallas import tpu as pltpu


_MASK_VALUE = -10000000000.0   # same constant the PyTorch module uses


# ---------------------------------------------------------------------------
# Kernel 1: fused Q / (K|V) projections.  Weights arrive pre-transposed:
#   wq  : [D, D]   = W_Q.T * (1/sqrt(D))      (scale folded in on the host)
#   wkv : [D, 2D]  = [W_K.T | W_V.T]
# ---------------------------------------------------------------------------
def _proj_kernel(y_ref, x_ref, wq_ref, wkv_ref, q_ref, k_ref, v_ref, *, d):
    # bf16 operands + f32 accumulation: all TPU MXUs are bf16-native.
    y = y_ref[...].astype(jnp.bfloat16)
    x = x_ref[...].astype(jnp.bfloat16)
    q_ref[...] = jnp.dot(y, wq_ref[...],
                         preferred_element_type=jnp.float32).astype(q_ref.dtype)
    # One wide matmul instead of two narrow ones: x @ [Wk.T | Wv.T] -> (tm, 2D).
    kv = jnp.dot(x, wkv_ref[...], preferred_element_type=jnp.float32)
    k_ref[...] = kv[:, :d].astype(k_ref.dtype)
    v_ref[...] = kv[:, d:].astype(v_ref.dtype)


# ---------------------------------------------------------------------------
# Kernel 2: banded flash attention.
# Grid = (B, num_q_tiles, band).  Q/K/V are reshaped to (B, n_tiles, tile, D)
# so all indexing is plain (possibly dynamic) integer block indexing.
# kv_resident=True  -> K/V blocks are the full (n_tiles, tile, D) per batch,
#                      sliced in-kernel (one DMA per batch, no band re-reads).
# kv_resident=False -> one (tile, D) KV tile is streamed per band slot.
# ---------------------------------------------------------------------------
def _attn_kernel(q_ref, k_ref, v_ref, o_ref, m_sc, l_sc, acc_sc, *,
                 window_size, tile, off_left, num_kv_tiles, kv_resident):
    qi = pl.program_id(1)
    l = pl.program_id(2)

    @pl.when(l == 0)
    def _init():
        m_sc[...] = jnp.full_like(m_sc, -jnp.inf)
        l_sc[...] = jnp.zeros_like(l_sc)
        acc_sc[...] = jnp.zeros_like(acc_sc)

    kv = qi - off_left + l                 # absolute kv tile for this band slot
    valid = jnp.logical_and(kv >= 0, kv < num_kv_tiles)
    dq = off_left - l                      # == qi - kv  (depends only on l)
    # A (qi, kv) tile pair needs masking only if it can reach |i-j| > window.
    needs_mask = (jnp.abs(dq) * tile + (tile - 1)) > window_size

    def step(use_mask):
        q = q_ref[0, 0]                                    # (tile, D) bf16
        if kv_resident:
            k = k_ref[0, kv]                               # (tile, D) bf16
            v = v_ref[0, kv]
        else:
            k = k_ref[0, 0]
            v = v_ref[0, 0]

        # Contract both operands on their last dim: no explicit K transpose.
        s = lax.dot_general(q, k, dimension_numbers=(((1,), (1,)), ((), ())),
                            preferred_element_type=jnp.float32)

        if use_mask:
            # Relative-index mask: rel = r - c compared against two scalars
            # derived from (qi - kv)*tile +- window (no absolute-iota adds).
            rel = (lax.broadcasted_iota(jnp.int32, (tile, tile), 0)
                   - lax.broadcasted_iota(jnp.int32, (tile, tile), 1))
            lo = -window_size - dq * tile
            hi = window_size - dq * tile
            mask = jnp.logical_and(rel >= lo, rel <= hi)
            s = jnp.where(mask, s, jnp.float32(_MASK_VALUE))

        # Online-softmax update (f32 accumulators).
        m_prev = m_sc[...]
        m_new = jnp.maximum(m_prev, jnp.max(s, axis=-1, keepdims=True))
        alpha = jnp.exp(m_prev - m_new)
        p = jnp.exp(s - m_new)
        if use_mask:
            # Robust even when a row is fully masked in this tile.
            p = jnp.where(mask, p, jnp.float32(0.0))
        l_sc[...] = alpha * l_sc[...] + jnp.sum(p, axis=-1, keepdims=True)
        acc_sc[...] = alpha * acc_sc[...] + jnp.dot(
            p.astype(jnp.bfloat16), v, preferred_element_type=jnp.float32)
        m_sc[...] = m_new

    # Interior tiles skip all mask work; only boundary tiles pay for it.
    @pl.when(jnp.logical_and(valid, needs_mask))
    def _boundary():
        step(True)

    @pl.when(jnp.logical_and(valid, jnp.logical_not(needs_mask)))
    def _interior():
        step(False)

    @pl.when(l == pl.num_programs(2) - 1)
    def _finalize():
        o_ref[0, 0] = (acc_sc[...] *
                       pl.reciprocal(l_sc[...], approx=False)).astype(o_ref.dtype)


def window_based_cross_attention(X, Y, W_Q, W_K, W_V, window_size, *,
                                 max_tile=128,
                                 max_kv_resident_bytes=16 * 1024 * 1024):
    """X, Y: [B, S, D].  W_*: [D, D] stored like nn.Linear ([out, in])."""
    B, S, D = X.shape
    assert Y.shape == (B, S, D)
    out_dtype = X.dtype
    scale = 1.0 / (D ** 0.5)

    # --------------------- fused projections (M = B*S) ---------------------
    M = B * S
    x2 = X.reshape(M, D)
    y2 = Y.reshape(M, D)
    wq = (W_Q.T * scale).astype(jnp.bfloat16)                 # scale folded in
    wkv = jnp.concatenate([W_K.T, W_V.T], axis=1).astype(jnp.bfloat16)

    # Largest row tile that divides M and keeps double-buffered blocks small.
    # TODO(synk): for very large D (>= ~2048) also tile the weight output dim
    # so the resident bf16 weights fit v7x's 64 MiB VMEM.
    budget = 16 * 1024 * 1024
    tm = None
    for cand in (2048, 1024, 512, 256, 128, 64, 32, 16, 8):
        if M % cand == 0 and 28 * cand * D <= budget:
            tm = cand
            break
    if tm is None:
        tm = M

    data_spec = pl.BlockSpec((tm, D), lambda i: (i, 0))
    out_spec = pl.BlockSpec((tm, D), lambda i: (i, 0))
    # Constant index_map: weights fetched once, VMEM-resident across the grid.
    wq_spec = pl.BlockSpec((D, D), lambda i: (0, 0))
    wkv_spec = pl.BlockSpec((D, 2 * D), lambda i: (0, 0))

    q2, k2, v2 = pl.pallas_call(
        functools.partial(_proj_kernel, d=D),
        out_shape=(jax.ShapeDtypeStruct((M, D), jnp.bfloat16),) * 3,
        grid_spec=pltpu.PrefetchScalarGridSpec(
            num_scalar_prefetch=0,
            grid=(M // tm,),
            in_specs=[data_spec, data_spec, wq_spec, wkv_spec],
            out_specs=(out_spec,) * 3,
        ),
        compiler_params=pltpu.CompilerParams(
            dimension_semantics=("parallel",),
            vmem_limit_bytes=32 * 1024 * 1024),
    )(y2, x2, wq, wkv)

    # ------------------------ banded flash attention ------------------------
    tile = min(max_tile, S)
    assert S % tile == 0, "seq_len must be divisible by the tile size"
    n_tiles = S // tile

    # Band of KV tiles that can intersect a query tile's window, clamped to
    # the real tile count (no dead grid steps / wasted DMA when window >= S).
    off_left = min((window_size + tile - 1) // tile, n_tiles - 1)
    off_right = min((tile - 1 + window_size) // tile, n_tiles - 1)
    band = off_left + off_right + 1

    # Free (contiguous) reshape to 4D so all block indexing is integer-based.
    Q4 = q2.reshape(B, n_tiles, tile, D)
    K4 = k2.reshape(B, n_tiles, tile, D)
    V4 = v2.reshape(B, n_tiles, tile, D)

    # Resident K/V fast path when double-buffered bf16 K+V fit in ~16 MiB.
    kv_resident = (8 * S * D) <= max_kv_resident_bytes

    qo_spec = pl.BlockSpec((1, 1, tile, D), lambda b, qi, l: (b, qi, 0, 0))
    if kv_resident:
        kv_spec = pl.BlockSpec((1, n_tiles, tile, D),
                               lambda b, qi, l: (b, 0, 0, 0))
    else:
        def kv_map(b, qi, l):
            kv = qi - off_left + l
            # Clamp only for DMA safety; compute is skipped for invalid slots.
            return (b, jnp.maximum(jnp.minimum(kv, n_tiles - 1), 0), 0, 0)
        kv_spec = pl.BlockSpec((1, 1, tile, D), kv_map)

    out4 = pl.pallas_call(
        functools.partial(_attn_kernel, window_size=window_size, tile=tile,
                          off_left=off_left, num_kv_tiles=n_tiles,
                          kv_resident=kv_resident),
        out_shape=jax.ShapeDtypeStruct((B, n_tiles, tile, D), out_dtype),
        grid_spec=pltpu.PrefetchScalarGridSpec(
            num_scalar_prefetch=0,
            grid=(B, n_tiles, band),
            in_specs=[qo_spec, kv_spec, kv_spec],
            out_specs=qo_spec,
            scratch_shapes=[pltpu.VMEM((tile, 1), jnp.float32),
                            pltpu.VMEM((tile, 1), jnp.float32),
                            pltpu.VMEM((tile, D), jnp.float32)]),
        compiler_params=pltpu.CompilerParams(
            dimension_semantics=("parallel", "parallel", "arbitrary"),
            vmem_limit_bytes=32 * 1024 * 1024),
    )(Q4, K4, V4)
    return out4.reshape(B, S, D)


# ---------------------------------------------------------------------------
# Pure-JAX reference (f32), mirroring the PyTorch module exactly.
# ---------------------------------------------------------------------------
def _reference(X, Y, W_Q, W_K, W_V, window_size):
    D = X.shape[-1]
    S = X.shape[1]
    Q = Y @ W_Q.T
    K = X @ W_K.T
    V = X @ W_V.T
    scores = (Q @ jnp.swapaxes(K, -2, -1)) / (D ** 0.5)
    i = jnp.arange(S)[:, None]
    j = jnp.arange(S)[None, :]
    mask = jnp.abs(i - j) <= window_size
    scores = jnp.where(mask[None], scores, _MASK_VALUE)
    attn = jax.nn.softmax(scores, axis=-1)
    return attn @ V


def _make_inputs(key, B, S, D):
    kx, ky, kq, kk, kv = jax.random.split(key, 5)
    X = jax.random.normal(kx, (B, S, D), dtype=jnp.float32)
    Y = jax.random.normal(ky, (B, S, D), dtype=jnp.float32)
    bound = 1.0 / (D ** 0.5)           # nn.Linear-style uniform init, bias=False
    W_Q = jax.random.uniform(kq, (D, D), jnp.float32, -bound, bound)
    W_K = jax.random.uniform(kk, (D, D), jnp.float32, -bound, bound)
    W_V = jax.random.uniform(kv, (D, D), jnp.float32, -bound, bound)
    return X, Y, W_Q, W_K, W_V


if __name__ == "__main__":
    key = jax.random.PRNGKey(0)
    k1, k2, k3 = jax.random.split(key, 3)
    # bf16 MXU matmuls (f32 accumulation) -> compare against f32 reference with
    # a bf16-appropriate tolerance.
    ATOL = RTOL = 2e-2

    # Test 1: module's natural small shape (resident-KV path, boundary masking).
    X, Y, W_Q, W_K, W_V = _make_inputs(k1, 2, 8, 32)
    out = jax.block_until_ready(
        window_based_cross_attention(X, Y, W_Q, W_K, W_V, 2))
    ref = _reference(X, Y, W_Q, W_K, W_V, 2)
    assert out.shape == (2, 8, 32)
    assert jnp.allclose(out, ref, atol=ATOL, rtol=RTOL), "test1 mismatch"

    # Test 2: streamed (non-resident) banded path, interior + boundary tiles.
    X, Y, W_Q, W_K, W_V = _make_inputs(k2, 1, 512, 128)
    out = jax.block_until_ready(
        window_based_cross_attention(X, Y, W_Q, W_K, W_V, 150,
                                     max_kv_resident_bytes=0))
    ref = _reference(X, Y, W_Q, W_K, W_V, 150)
    assert jnp.allclose(out, ref, atol=ATOL, rtol=RTOL), "test2 mismatch"

    # Test 3: resident-KV path with unmasked (interior) tiles.
    X, Y, W_Q, W_K, W_V = _make_inputs(k3, 1, 256, 64)
    out = jax.block_until_ready(
        window_based_cross_attention(X, Y, W_Q, W_K, W_V, 256))
    ref = _reference(X, Y, W_Q, W_K, W_V, 256)
    assert jnp.allclose(out, ref, atol=ATOL, rtol=RTOL), "test3 mismatch"

    print("KERNEL_OK")
</pallas_src>

<mosaic_0001>
module attributes {stable_mosaic.version = 11 : i64} {
  func.func @_proj_kernel(%arg0: i32, %arg1: memref<16x32xf32, #tpu.memory_space<vmem>>, %arg2: memref<16x32xf32, #tpu.memory_space<vmem>>, %arg3: memref<32x32xbf16, #tpu.memory_space<vmem>>, %arg4: memref<32x64xbf16, #tpu.memory_space<vmem>>, %arg5: memref<16x32xbf16, #tpu.memory_space<vmem>>, %arg6: memref<16x32xbf16, #tpu.memory_space<vmem>>, %arg7: memref<16x32xbf16, #tpu.memory_space<vmem>>) attributes {dimension_semantics = [#tpu.dimension_semantics<parallel>], iteration_bounds = array<i64: 1>, scalar_prefetch = 0 : i64, scratch_operands = 0 : i64, tpu.core_type = #tpu.core_type<tc>, window_params = [{transform_indices = @transform_0, window_bounds = array<i64: 16, 32>}, {transform_indices = @transform_1, window_bounds = array<i64: 16, 32>}, {pipeline_mode = #tpu.pipeline_mode<synchronous>, transform_indices = @transform_2, window_bounds = array<i64: 32, 32>}, {pipeline_mode = #tpu.pipeline_mode<synchronous>, transform_indices = @transform_3, window_bounds = array<i64: 32, 64>}, {transform_indices = @transform_4, window_bounds = array<i64: 16, 32>}, {transform_indices = @transform_5, window_bounds = array<i64: 16, 32>}, {transform_indices = @transform_6, window_bounds = array<i64: 16, 32>}]} {
    %c0 = arith.constant 0 : index
    %c0_0 = arith.constant 0 : index
    %0 = vector.load %arg1[%c0, %c0_0] : memref<16x32xf32, #tpu.memory_space<vmem>>, vector<16x32xf32>
    %1 = arith.truncf %0 : vector<16x32xf32> to vector<16x32xbf16>
    %c0_1 = arith.constant 0 : index
    %c0_2 = arith.constant 0 : index
    %2 = vector.load %arg2[%c0_1, %c0_2] : memref<16x32xf32, #tpu.memory_space<vmem>>, vector<16x32xf32>
    %3 = arith.truncf %2 : vector<16x32xf32> to vector<16x32xbf16>
    %c0_3 = arith.constant 0 : index
    %c0_4 = arith.constant 0 : index
    %4 = vector.load %arg3[%c0_3, %c0_4] : memref<32x32xbf16, #tpu.memory_space<vmem>>, vector<32x32xbf16>
    %cst = arith.constant dense<0.000000e+00> : vector<16x32xf32>
    %5 = tpu.matmul %1, %4, %cst {dimension_numbers = #tpu.dot_dimension_numbers<[1], [0], [0], [1], [0, 0, 1, 1], [], []>} : vector<16x32xbf16>, vector<32x32xbf16>, vector<16x32xf32> -> vector<16x32xf32>
    %6 = arith.truncf %5 : vector<16x32xf32> to vector<16x32xbf16>
    %c0_5 = arith.constant 0 : index
    %c0_6 = arith.constant 0 : index
    %7 = vector.load %arg5[%c0_5, %c0_6] : memref<16x32xbf16, #tpu.memory_space<vmem>>, vector<16x32xbf16>
    tpu.vector_store %arg5[%c0_5, %c0_6], %6 {strides = array<i32>} : memref<16x32xbf16, #tpu.memory_space<vmem>>, vector<16x32xbf16>,
    %c0_7 = arith.constant 0 : index
    %c0_8 = arith.constant 0 : index
    %8 = vector.load %arg4[%c0_7, %c0_8] : memref<32x64xbf16, #tpu.memory_space<vmem>>, vector<32x64xbf16>
    %cst_9 = arith.constant dense<0.000000e+00> : vector<16x64xf32>
    %9 = tpu.matmul %3, %8, %cst_9 {dimension_numbers = #tpu.dot_dimension_numbers<[1], [0], [0], [1], [0, 0, 1, 1], [], []>} : vector<16x32xbf16>, vector<32x64xbf16>, vector<16x64xf32> -> vector<16x64xf32>
    %10 = vector.extract_strided_slice %9 {offsets = [0, 0], sizes = [16, 32], strides = [1, 1]} : vector<16x64xf32> to vector<16x32xf32>
    %11 = arith.truncf %10 : vector<16x32xf32> to vector<16x32xbf16>
    %c0_10 = arith.constant 0 : index
    %c0_11 = arith.constant 0 : index
    %12 = vector.load %arg6[%c0_10, %c0_11] : memref<16x32xbf16, #tpu.memory_space<vmem>>, vector<16x32xbf16>
    tpu.vector_store %arg6[%c0_10, %c0_11], %11 {strides = array<i32>} : memref<16x32xbf16, #tpu.memory_space<vmem>>, vector<16x32xbf16>,
    %13 = vector.extract_strided_slice %9 {offsets = [0, 32], sizes = [16, 32], strides = [1, 1]} : vector<16x64xf32> to vector<16x32xf32>
    %14 = arith.truncf %13 : vector<16x32xf32> to vector<16x32xbf16>
    %c0_12 = arith.constant 0 : index
    %c0_13 = arith.constant 0 : index
    %15 = vector.load %arg7[%c0_12, %c0_13] : memref<16x32xbf16, #tpu.memory_space<vmem>>, vector<16x32xbf16>
    tpu.vector_store %arg7[%c0_12, %c0_13], %14 {strides = array<i32>} : memref<16x32xbf16, #tpu.memory_space<vmem>>, vector<16x32xbf16>,
    return
  }
  func.func @transform_0(%arg0: i32) -> (i32, i32) {
    %c0_i32 = arith.constant 0 : i32
    %c0_i32_0 = arith.constant 0 : i32
    return %arg0, %c0_i32 : i32, i32
  }
  func.func @transform_1(%arg0: i32) -> (i32, i32) {
    %c0_i32 = arith.constant 0 : i32
    %c0_i32_0 = arith.constant 0 : i32
    return %arg0, %c0_i32 : i32, i32
  }
  func.func @transform_2(%arg0: i32) -> (i32, i32) {
    %c0_i32 = arith.constant 0 : i32
    %c0_i32_0 = arith.constant 0 : i32
    %c0_i32_1 = arith.constant 0 : i32
    return %c0_i32, %c0_i32_0 : i32, i32
  }
  func.func @transform_3(%arg0: i32) -> (i32, i32) {
    %c0_i32 = arith.constant 0 : i32
    %c0_i32_0 = arith.constant 0 : i32
    %c0_i32_1 = arith.constant 0 : i32
    return %c0_i32, %c0_i32_0 : i32, i32
  }
  func.func @transform_4(%arg0: i32) -> (i32, i32) {
    %c0_i32 = arith.constant 0 : i32
    %c0_i32_0 = arith.constant 0 : i32
    return %arg0, %c0_i32 : i32, i32
  }
  func.func @transform_5(%arg0: i32) -> (i32, i32) {
    %c0_i32 = arith.constant 0 : i32
    %c0_i32_0 = arith.constant 0 : i32
    return %arg0, %c0_i32 : i32, i32
  }
  func.func @transform_6(%arg0: i32) -> (i32, i32) {
    %c0_i32 = arith.constant 0 : i32
    %c0_i32_0 = arith.constant 0 : i32
    return %arg0, %c0_i32 : i32, i32
  }
}

</mosaic_0001>

<bundles_post_ra>
// kernel: tpu_custom_call.1
= control target key start
LH: loop header
LB: loop body
LE: loop exit
PB: predicated region body
PF: predicated region fallthrough
CT: control target
= control target key end

     0   :  { %12 = vsyncpa [#allocation3], 0  ;;  %s535_s0 = inlined_call_operand.hbm [shape: f32[16,32], index: 0, kind: input, shape index: {}]   ;;  %s536_s1 = inlined_call_operand.hbm [shape: f32[16,32], index: 1, kind: input, shape index: {}]   ;;  %s537_s2 = inlined_call_operand.hbm [shape: bf16[32,32], index: 2, kind: input, shape index: {}]   ;;  %s538_s3 = inlined_call_operand.hbm [shape: bf16[32,64], index: 3, kind: input, shape index: {}]   ;;  %s539_s4 = inlined_call_operand.hbm [shape: bf16[16,32], index: 4, kind: output, shape index: {0}]   ;;  %s540_s5 = inlined_call_operand.hbm [shape: bf16[16,32], index: 5, kind: output, shape index: {1}]   ;;  %s541_s6 = inlined_call_operand.hbm [shape: bf16[16,32], index: 6, kind: output, shape index: {2}]  }
   0x1   :  { %13 = vsyncpa [#allocation6], 0 }
   0x2   :  { %14 = vsyncpa [#allocation9], 0 }
   0x3   :  { %15 = vsyncpa [#allocation4], 0 }
   0x4   :  { %16 = vsyncpa [#allocation12], 0  ;;  %s34_s23 = sshll.u32 %s536_s1, 4  ;;  %s446_s24 = smov [#allocation5]   ;;  %s35_s23 = int_to_ptr.hbm [resolvable:$true] %s34_s23 }
   0x5   :  { %s36_s25 = sshll.u32 %s446_s24, 4  ;;  %s21_s28 = sshll.u32 %s535_s0, 4  ;;  %s37_s25 = int_to_ptr.vmem [resolvable:$true] %s36_s25  ;;  %s22_s28 = int_to_ptr.hbm [resolvable:$true] %s21_s28 }
   0x6   :  { %s447_s29 = smov 128   ;;  %s448_s30 = smov 8  }
   0x7   :  { %42 = dma.hbm_to_vmem [thread:$0]  %s35_s23, 256, %s37_s25, [#allocation6], %s447_s29, %s447_s29, %s448_s30  }
   0x8   :  { %s449_s7 = smov [#allocation2]   ;;  %s47_s11 = sshll.u32 %s537_s2, 4  ;;  %s48_s11 = int_to_ptr.hbm [resolvable:$true] %s47_s11 }
   0x9   :  { %s23_s8 = sshll.u32 %s449_s7, 4  ;;  %s450_s1 = smov [#allocation7]   ;;  %s24_s8 = int_to_ptr.vmem [resolvable:$true] %s23_s8 }
   0xa   :  { %29 = dma.hbm_to_vmem [thread:$0]  %s22_s28, 256, %s24_s8, [#allocation3], %s447_s29, %s447_s29, %s448_s30  }
   0xb   :  { %s49_s12 = sshll.u32 %s450_s1, 4  ;;  %s60_s0 = sshll.u32 %s538_s3, 4  ;;  %s50_s12 = int_to_ptr.vmem [resolvable:$true] %s49_s12  ;;  %s61_s0 = int_to_ptr.hbm [resolvable:$true] %s60_s0 }
   0xc   :  { %s451_s15 = smov 64   ;;  %s452_s16 = smov 4  }
   0xd   :  { %55 = dma.hbm_to_vmem [thread:$0]  %s48_s11, 256, %s50_s12, [#allocation6], %s451_s15, %s451_s15, %s452_s16  }
   0xe   :  { %s453_s17 = smov [#allocation8]  }
   0xf   :  { %s62_s18 = sshll.u32 %s453_s17, 4  ;;  %s63_s18 = int_to_ptr.vmem [resolvable:$true] %s62_s18 }
  0x10   :  { %68 = dma.hbm_to_vmem [thread:$0]  %s61_s0, 256, %s63_s18, [#allocation9], %s451_s15, %s451_s15, %s452_s16  }
  0x11   :  { %436 = dma.done.wait [#allocation3], 256  }
  0x12   :  { %437 = vsyncadd [#allocation3], 4294967040 }
  0x13   :  { %438 = dma.done.wait [#allocation6], 512  }
  0x14   :  { %439 = vsyncadd [#allocation6], 4294966784 }
  0x15   :  { %440 = dma.done.wait [#allocation9], 256  }
  0x16   :  { %441 = vsyncadd [#allocation9], 4294967040  ;;  %v255_v0 = vld [vmem:[#allocation8 + $0x8] sm:$0xff]  ;;  %v253_v1 = vld [vmem:[#allocation7 + $0x8] sm:$0xff]  ;;  %vm108_vm0 = vcmask 261120   ;;  %vm128_vm1 = vcmask 257024  }
  0x17   :  { %156 = vmatpush.bf16.msra.mxu1 %v255_v0  ;;  %v254_v2 = vld [vmem:[#allocation8] sm:$0xff]  ;;  %v90_v4 = vld [vmem:[#allocation5 + $0x8] sm:$0xff]  ;;  %118 = vmatpush.bf16.msra.mxu0 %v253_v1  ;;  %v252_v5 = vld [vmem:[#allocation7] sm:$0xff]  ;;  %s454_s2 = smov 96   ;;  %s455_s3 = smov [#allocation11]  }
  0x18   :  { %v89_v3 = vld [vmem:[#allocation5] sm:$0xff]  ;;  %v86_v6 = vld [vmem:[#allocation2] sm:$0xff]  ;;  %v87_v7 = vld [vmem:[#allocation2 + $0x8] sm:$0xff]  ;;  %s195_s19 = sshll.u32 %s455_s3, 4  ;;  %s197_s22 = sshll.u32 %s540_s5, 4  ;;  %s196_s19 = int_to_ptr.vmem [resolvable:$true] %s195_s19  ;;  %s198_s22 = int_to_ptr.hbm [resolvable:$true] %s197_s22 }
  0x19   :  { %v91_v8 = vpack.c.bf16 %v90_v4, %v89_v3  ;;  %v88_v9 = vpack.c.bf16 %v87_v7, %v86_v6  ;;  %s456_s23 = smov [#allocation10]   ;;  %s184_s27 = sshll.u32 %s539_s4, 4  ;;  %s185_s27 = int_to_ptr.hbm [resolvable:$true] %s184_s27 }
  0x1a   :  { %s182_s24 = sshll.u32 %s456_s23, 4  ;;  %s457_s4 = smov [#allocation13]   ;;  %s183_s24 = int_to_ptr.vmem [resolvable:$true] %s182_s24 }
  0x1b   :  { %157 = vmatpush.bf16.msra.mxu1 %v254_v2  ;;  %119 = vmatpush.bf16.msra.mxu0 %v252_v5  ;;  %s208_s5 = sshll.u32 %s457_s4, 4  ;;  %s210_s30 = sshll.u32 %s541_s6, 4  ;;  %s209_s5 = int_to_ptr.vmem [resolvable:$true] %s208_s5  ;;  %s211_s30 = int_to_ptr.hbm [resolvable:$true] %s210_s30 }
  0x1e   :  { %251 = vmatmul.msk.bf16.vlgmr.msra.gmra.mxu1 %vm108_vm0, %v91_v8  ;;  %242 = vmatmul.msk.bf16.vlgmr.msra.gmra.mxu0 %vm108_vm0, %v88_v9 }
  0x9b   :  { %v159_v10 = vpop.f32.mrf.mxu1  ;;  %v121_v12 = vpop.f32.mrf.mxu0 }
  0x9c   :  { %v164_v11 = vpack.c.bf16 %v159_v10, %v159_v10  ;;  %v126_v13 = vpack.c.bf16 %v121_v12, %v121_v12 }
  0x9e   :  { %166 = vst.msk [vmem:[#allocation11] sm:$0xf] %vm128_vm1, %v164_v11  ;;  %170 = vrot.lane.b32.xlu0 %v164_v11, %s454_s2 }
  0x9f   :  { %129 = vst.msk [vmem:[#allocation10] sm:$0xf] %vm128_vm1, %v126_v13 }
  0xa3   :  { %v161_v14 = vpop.f32.mrf.mxu1  ;;  %v123_v16 = vpop.f32.mrf.mxu0 }
  0xa4   :  { %v165_v15 = vpack.c.bf16 %v161_v14, %v161_v14  ;;  %v127_v17 = vpack.c.bf16 %v123_v16, %v123_v16 }
  0xa6   :  { %167 = vst.msk [vmem:[#allocation11 + $0x4] sm:$0xf] %vm128_vm1, %v165_v15  ;;  %172 = vrot.lane.b32.xlu0 %v165_v15, %s454_s2 }
  0xa7   :  { %130 = vst.msk [vmem:[#allocation10 + $0x4] sm:$0xf] %vm128_vm1, %v127_v17  ;;  %203 = dma.vmem_to_hbm [thread:$0]  %s196_s19, 128, %s198_s22, [#allocation12], %s451_s15, %s451_s15, %s452_s16  }
  0xa8   :  { %190 = dma.vmem_to_hbm [thread:$0]  %s183_s24, 128, %s185_s27, [#allocation4], %s451_s15, %s451_s15, %s452_s16  }
 0x110   :  { %v171_v18 = vpop.permute.xlu0 %170 }
 0x111   :  { %176 = vst.msk [vmem:[#allocation13] sm:$0xf] %vm128_vm1, %v171_v18 }
 0x118   :  { %v173_v19 = vpop.permute.xlu0 %172 }
 0x119   :  { %177 = vst.msk [vmem:[#allocation13 + $0x4] sm:$0xf] %vm128_vm1, %v173_v19 }
 0x11a   :  { %216 = dma.vmem_to_hbm [thread:$0]  %s209_s5, 128, %s211_s30, [#allocation12], %s451_s15, %s451_s15, %s452_s16  }
 0x11b   :  { %442 = dma.done.wait [#allocation4], 128  }
 0x11c   :  { %443 = vsyncadd [#allocation4], 4294967168 }
 0x11d   :  { %444 = dma.done.wait [#allocation12], 256  }
 0x11e   :  { %445 = vsyncadd [#allocation12], 4294967040 }
 0x11f   :  { %229 = vsyncpa [#allocation3], 1 }
 0x120   :  { %230 = vsyncpa [#allocation6], 1 }
 0x121   :  { %231 = vsyncpa [#allocation9], 1 }
 0x122   :  { %232 = vsyncpa [#allocation4], 1 }
 0x123   :  { %233 = vsyncpa [#allocation12], 1 }

</bundles_post_ra>
